<compile_context>
chip_gen: v7x
topology: tpu7x:2x2x1
jax: 0.10.0
libtpu: 0.0.40
codegen_flags: <defaults>
</compile_context>

<pallas_src>
import functools

import jax
import jax.numpy as jnp
from jax.experimental import pallas as pl
from jax.experimental.pallas import tpu as pltpu

_LANE = 128


def _round_up(x, m):
    return ((x + m - 1) // m) * m


def _choose_tile(dim, max_tile, align):
    """Tile-first sizing: n = ceil(dim / max_tile) tiles of equal-ish size,
    each rounded up to `align`.  Returns (padded_dim, tile); padded_dim is an
    exact multiple of tile and waste is at most n*(align-1)."""
    n = -(-dim // max_tile)                      # ceil div
    tile = -(-dim // n)                          # ceil div
    tile = _round_up(tile, align)
    return n * tile, tile


def _sublane_align(dtype):
    """8 sublanes for 4-byte dtypes, 16 for 2-byte, 32 for 1-byte."""
    return max(8, 32 // jnp.dtype(dtype).itemsize)


# ----------------------------------------------------------------------------
# Kernels
# ----------------------------------------------------------------------------
def _linear_kernel_f32(x_ref, w_ref, b_ref, o_ref):
    """f32 output: accumulate directly into the resident output block.

    x_ref: (tm, tk)   activations tile
    w_ref: (tk, tn)   weight tile, already in (K, N) layout -> plain MXU dot
    b_ref: (1,  tn)   bias tile
    o_ref: (tm, tn)   output tile (resident across the K grid axis)
    """
    k = pl.program_id(2)

    @pl.when(k == 0)
    def _init():
        o_ref[...] = jnp.broadcast_to(
            b_ref[...].astype(jnp.float32), o_ref.shape)

    o_ref[...] += jnp.dot(x_ref[...], w_ref[...],
                          preferred_element_type=jnp.float32)


def _linear_kernel_acc(x_ref, w_ref, b_ref, o_ref, acc_ref):
    """Non-f32 output: accumulate in an f32 VMEM scratch, cast on the last K."""
    k = pl.program_id(2)

    @pl.when(k == 0)
    def _init():
        acc_ref[...] = jnp.broadcast_to(
            b_ref[...].astype(jnp.float32), acc_ref.shape)

    acc_ref[...] += jnp.dot(x_ref[...], w_ref[...],
                            preferred_element_type=jnp.float32)

    @pl.when(k == pl.num_programs(2) - 1)
    def _store():
        o_ref[...] = acc_ref[...].astype(o_ref.dtype)


# ----------------------------------------------------------------------------
# One-time parameter preparation (NOT in the per-step hot path)
# ----------------------------------------------------------------------------
def prepare_params(weight, bias=None, *, max_tn=1024, max_tk=1024):
    """Transpose the PyTorch (out, in) weight to (in, out) = (K, N) and pad
    K / N to tile multiples ONCE, so the forward pass never re-pads or
    transposes W (no extra HBM pass, no per-K-step XLU transpose in-kernel).

    Returns (w_kn_padded, bias_row_padded, meta) with meta = {n, k, tn, tk}.
    """
    N, K = weight.shape
    Kp, tk = _choose_tile(K, max_tk, _LANE)
    Np, tn = _choose_tile(N, max_tn, _LANE)

    w_kn = jnp.asarray(weight).T                       # (K, N)
    if (Kp, Np) != (K, N):
        w_kn = jnp.pad(w_kn, ((0, Kp - K), (0, Np - N)))

    if bias is None:
        b_row = jnp.zeros((1, Np), dtype=weight.dtype)
    else:
        b_row = jnp.asarray(bias).reshape(1, N)
        if Np != N:
            b_row = jnp.pad(b_row, ((0, 0), (0, Np - N)))

    return w_kn, b_row, dict(n=N, k=K, tn=tn, tk=tk)


# ----------------------------------------------------------------------------
# Forward
# ----------------------------------------------------------------------------
@functools.partial(jax.jit, static_argnames=("n_out", "tn", "tk", "max_tm"))
def uniform_init_linear_forward(x, w_kn, b_row, *, n_out, tn, tk, max_tm=512):
    """y = x @ W.T + b with W supplied pre-transposed/padded by prepare_params.

    x:     (B, in_features)
    w_kn:  (Kp, Np)  padded (in, out) layout weight
    b_row: (1, Np)   padded bias row
    returns (B, n_out)
    """
    B, K = x.shape
    Kp, Np = w_kn.shape
    assert K <= Kp and Kp % tk == 0 and Np % tn == 0

    # Batch tiling: dtype-aware sublane alignment; small batch -> single M tile.
    align_m = _sublane_align(x.dtype)
    Mp, tm = _choose_tile(B, max_tm, align_m)
    grid_m = Mp // tm

    # Keep both v7x TensorCores busy when there is only one M tile: split N.
    if grid_m == 1 and Np // tn == 1 and Np % (2 * _LANE) == 0:
        tn = Np // 2

    # Only the (small) activations are padded per call.
    x_p = x
    if (Mp, Kp) != (B, K):
        x_p = jnp.pad(x, ((0, Mp - B), (0, Kp - K)))

    out_is_f32 = (x.dtype == jnp.float32)
    if out_is_f32:
        kernel = _linear_kernel_f32
        scratch = ()
    else:
        kernel = _linear_kernel_acc
        scratch = (pltpu.VMEM((tm, tn), jnp.float32),)

    itemsize = jnp.dtype(x.dtype).itemsize
    # Double-buffered pipeline footprint (+ scratch accumulator if any).
    vmem_bytes = 2 * (tm * tk + tk * tn + tm * tn + tn) * itemsize
    if not out_is_f32:
        vmem_bytes += tm * tn * 4
    # Floor at 32 MiB (harmless everywhere), cap at 48 MiB (safe under v7x's
    # 64 MiB physical per-TC VMEM; v5e/v6e have 128 MiB physical).
    vmem_limit = min(48 << 20, max(32 << 20, int(vmem_bytes * 1.25)))

    cost = pl.CostEstimate(
        flops=2 * Mp * Np * Kp,
        transcendentals=0,
        bytes_accessed=(Mp * Kp + Kp * Np + Mp * Np + Np) * itemsize)

    out_p = pl.pallas_call(
        kernel,
        out_shape=jax.ShapeDtypeStruct((Mp, Np), x.dtype),
        grid_spec=pltpu.PrefetchScalarGridSpec(
            num_scalar_prefetch=0,
            grid=(Mp // tm, Np // tn, Kp // tk),
            in_specs=[
                pl.BlockSpec((tm, tk), lambda i, j, k: (i, k)),   # x
                pl.BlockSpec((tk, tn), lambda i, j, k: (k, j)),   # W (K, N)
                pl.BlockSpec((1, tn), lambda i, j, k: (0, j)),    # bias
            ],
            out_specs=pl.BlockSpec((tm, tn), lambda i, j, k: (i, j)),
            scratch_shapes=scratch,
        ),
        compiler_params=pltpu.CompilerParams(
            dimension_semantics=("parallel", "parallel", "arbitrary"),
            vmem_limit_bytes=vmem_limit),
        cost_estimate=cost,
    )(x_p, w_kn, b_row)

    return out_p[:B, :n_out]


# ----------------------------------------------------------------------------
# Parameter init (xavier_uniform_ weight, zero bias) — matches the spec module
# ----------------------------------------------------------------------------
def init_params(key, in_features, out_features, init_scale=1, bias=True,
                dtype=jnp.float32):
    """xavier_uniform_ + zero bias.  Note: the PyTorch module accepts
    init_scale but calls xavier_uniform_ with its default gain, so init_scale
    does not affect the weights (kept only for API parity)."""
    del init_scale
    bound = float(jnp.sqrt(6.0 / (in_features + out_features)))
    w = jax.random.uniform(key, (out_features, in_features), dtype=dtype,
                           minval=-bound, maxval=bound)
    b = jnp.zeros((out_features,), dtype=dtype) if bias else None
    return w, b


if __name__ == "__main__":
    key = jax.random.PRNGKey(0)
    k_x, k_w = jax.random.split(key)

    B, IN_F, OUT_F = 2, 32, 64

    x = jax.random.normal(k_x, (B, IN_F), dtype=jnp.float32)
    weight, bias = init_params(k_w, IN_F, OUT_F, init_scale=1)

    # One-time layout prep (transpose + pad W / bias), outside the hot path.
    w_kn, b_row, meta = prepare_params(weight, bias)

    out = uniform_init_linear_forward(
        x, w_kn, b_row, n_out=meta["n"], tn=meta["tn"], tk=meta["tk"])
    out = jax.block_until_ready(out)

    # Reference check against plain XLA (not part of the hot path).
    ref = x @ weight.T + bias[None, :]
    assert out.shape == (B, OUT_F)
    assert jnp.allclose(out, ref, atol=1e-5, rtol=1e-5)

    print("KERNEL_OK")
</pallas_src>

<mosaic_0001>
module attributes {stable_mosaic.version = 11 : i64} {
  func.func @_linear_kernel_f32(%arg0: i32, %arg1: i32, %arg2: i32, %arg3: memref<8x128xf32, #tpu.memory_space<vmem>>, %arg4: memref<128x128xf32, #tpu.memory_space<vmem>>, %arg5: memref<1x128xf32, #tpu.memory_space<vmem>>, %arg6: memref<8x128xf32, #tpu.memory_space<vmem>>) attributes {dimension_semantics = [#tpu.dimension_semantics<parallel>, #tpu.dimension_semantics<parallel>, #tpu.dimension_semantics<arbitrary>], iteration_bounds = array<i64: 1, 1, 1>, scalar_prefetch = 0 : i64, scratch_operands = 0 : i64, tpu.core_type = #tpu.core_type<tc>, window_params = [{transform_indices = @transform_0, window_bounds = array<i64: 8, 128>}, {transform_indices = @transform_1, window_bounds = array<i64: 128, 128>}, {transform_indices = @transform_2, window_bounds = array<i64: 1, 128>}, {transform_indices = @transform_3, window_bounds = array<i64: 8, 128>}]} {
    %c0_i32 = arith.constant 0 : i32
    %0 = arith.cmpi eq, %arg2, %c0_i32 : i32
    %1 = arith.extui %0 : i1 to i32
    %c0_i32_0 = arith.constant 0 : i32
    %2 = arith.cmpi ne, %1, %c0_i32_0 : i32
    scf.if %2 {
      %c0_8 = arith.constant 0 : index
      %c0_9 = arith.constant 0 : index
      %9 = vector.load %arg5[%c0_8, %c0_9] : memref<1x128xf32, #tpu.memory_space<vmem>>, vector<1x128xf32>
      %10 = vector.shape_cast %9 : vector<1x128xf32> to vector<1x128xf32>
      %11 = vector.broadcast %10 : vector<1x128xf32> to vector<8x128xf32>
      %c0_10 = arith.constant 0 : index
      %c0_11 = arith.constant 0 : index
      %12 = vector.load %arg6[%c0_10, %c0_11] : memref<8x128xf32, #tpu.memory_space<vmem>>, vector<8x128xf32>
      tpu.vector_store %arg6[%c0_10, %c0_11], %11 {strides = array<i32>} : memref<8x128xf32, #tpu.memory_space<vmem>>, vector<8x128xf32>,
    } else {
    }
    %c0 = arith.constant 0 : index
    %c0_1 = arith.constant 0 : index
    %3 = vector.load %arg6[%c0, %c0_1] : memref<8x128xf32, #tpu.memory_space<vmem>>, vector<8x128xf32>
    %c0_2 = arith.constant 0 : index
    %c0_3 = arith.constant 0 : index
    %4 = vector.load %arg3[%c0_2, %c0_3] : memref<8x128xf32, #tpu.memory_space<vmem>>, vector<8x128xf32>
    %c0_4 = arith.constant 0 : index
    %c0_5 = arith.constant 0 : index
    %5 = vector.load %arg4[%c0_4, %c0_5] : memref<128x128xf32, #tpu.memory_space<vmem>>, vector<128x128xf32>
    %cst = arith.constant dense<0.000000e+00> : vector<8x128xf32>
    %6 = tpu.matmul %4, %5, %cst {dimension_numbers = #tpu.dot_dimension_numbers<[1], [0], [0], [1], [0, 0, 1, 1], [], []>} : vector<8x128xf32>, vector<128x128xf32>, vector<8x128xf32> -> vector<8x128xf32>
    %7 = arith.addf %3, %6 : vector<8x128xf32>
    %c0_6 = arith.constant 0 : index
    %c0_7 = arith.constant 0 : index
    %8 = vector.load %arg6[%c0_6, %c0_7] : memref<8x128xf32, #tpu.memory_space<vmem>>, vector<8x128xf32>
    tpu.vector_store %arg6[%c0_6, %c0_7], %7 {strides = array<i32>} : memref<8x128xf32, #tpu.memory_space<vmem>>, vector<8x128xf32>,
    return
  }
  func.func @transform_0(%arg0: i32, %arg1: i32, %arg2: i32) -> (i32, i32) {
    %c0_i32 = arith.constant 0 : i32
    return %arg0, %arg2 : i32, i32
  }
  func.func @transform_1(%arg0: i32, %arg1: i32, %arg2: i32) -> (i32, i32) {
    %c0_i32 = arith.constant 0 : i32
    return %arg2, %arg1 : i32, i32
  }
  func.func @transform_2(%arg0: i32, %arg1: i32, %arg2: i32) -> (i32, i32) {
    %c0_i32 = arith.constant 0 : i32
    %c0_i32_0 = arith.constant 0 : i32
    return %c0_i32, %arg1 : i32, i32
  }
  func.func @transform_3(%arg0: i32, %arg1: i32, %arg2: i32) -> (i32, i32) {
    %c0_i32 = arith.constant 0 : i32
    return %arg0, %arg1 : i32, i32
  }
}

</mosaic_0001>

<bundles_post_ra>
// kernel: uniform_init_linear_forward.1
= control target key start
LH: loop header
LB: loop body
LE: loop exit
PB: predicated region body
PF: predicated region fallthrough
CT: control target
= control target key end

     0   :  { %8 = vsyncpa [#allocation3], 0  ;;  %s242_s12 = smov [#allocation2]   ;;  %s289_s0 = inlined_call_operand.vmem [shape: f32[8,128], index: 0, kind: input, shape index: {}]   ;;  %s290_s1 = inlined_call_operand.hbm [shape: f32[128,128], index: 1, kind: input, shape index: {}]   ;;  %s291_s2 = inlined_call_operand.vmem [shape: f32[1,128], index: 2, kind: input, shape index: {}]   ;;  %s292_s3 = inlined_call_operand.vmem [shape: f32[8,128], index: 3, kind: output, shape index: {}]  }
   0x1   :  { %s16_s13 = sshll.u32 %s242_s12, 4  ;;  %s218_s16 = scalar_lea.hbm %s290_s1, 2048  ;;  %s17_s13 = int_to_ptr.vmem [resolvable:$true] %s16_s13 }
   0x2   :  { %p219_p0 = scmp.ne.s32.totalorder %s290_s1, %s218_s16  ;;  %p222_p1 = scmp.lt.u32.totalorder %s218_s16, %s290_s1 }
   0x4   :  { %p224_p2 = pnand %p222_p1, %p219_p0 }
   0x6   :  { %227 = shalt.err (!%p224_p2)
}
   0x7   :  { %s228_s21 = scalar_lea.vmem %s17_s13, 2048  ;;  %p233_p4 = scmp.lt.s32.totalorder %s17_s13, %s17_s13 }
   0x8   :  { %p229_p3 = scmp.ne.s32.totalorder %s17_s13, %s228_s21  ;;  %p234_p5 = scmp.lt.s32.totalorder %s228_s21, %s228_s21 }
   0xa   :  { %p235_p6 = por %p234_p5, %p233_p4 }
   0xc   :  { %p236_p7 = pnand %p235_p6, %p229_p3 }
   0xe   :  { %239 = shalt.err (!%p236_p7)
}
   0xf   :  { %s243_s22 = smov 128   ;;  %s244_s23 = smov 8  }
  0x10   :  { %22 = dma.hbm_to_vmem [thread:$0]  %s290_s1, 2048, %s17_s13, [#allocation3], %s243_s22, %s243_s22, %s244_s23  }
  0x11   :  { %240 = dma.done.wait [#allocation3], 2048  }
  0x12   :  { %241 = vsyncadd [#allocation3], 4294965248  ;;  %v245_v0 = vmov 0.0|0.0   ;;  %vm246_vm0 = vmmov 0   ;;  %v247_v1 = vmov 0.0   ;;  %v42_v2 = vld [vmem:[#allocation2] sm:$0xff] }
  0x13   :  { %188 = vmatprep.subr.bf16.mxu0 %v245_v0  ;;  %185 = vmatprep.mubr.msk.f32.mxu0 %vm246_vm0, %v247_v1  ;;  %v43_v3 = vld [vmem:[#allocation2 + $0x8] sm:$0xff]  ;;  %v44_v4 = vld [vmem:[#allocation2 + $0x10] sm:$0xff]  ;;  %v45_v6 = vld [vmem:[#allocation2 + $0x18] sm:$0xff] }
  0x14   :  { %v189_v5 = vpack.c.bf16 %v43_v3, %v42_v2  ;;  %v192_v7 = vpack.c.bf16 %v45_v6, %v44_v4  ;;  %v46_v8 = vld [vmem:[#allocation2 + $0x20] sm:$0xff]  ;;  %v47_v9 = vld [vmem:[#allocation2 + $0x28] sm:$0xff]  ;;  %v48_v11 = vld [vmem:[#allocation2 + $0x30] sm:$0xff] }
  0x15   :  { %v195_v10 = vpack.c.bf16 %v47_v9, %v46_v8  ;;  %v49_v12 = vld [vmem:[#allocation2 + $0x38] sm:$0xff]  ;;  %v50_v14 = vld [vmem:[#allocation2 + $0x40] sm:$0xff]  ;;  %v51_v15 = vld [vmem:[#allocation2 + $0x48] sm:$0xff] }
  0x16   :  { %190 = vmatpush3.bf16.msra.mxu0 %v189_v5  ;;  %v198_v13 = vpack.c.bf16 %v49_v12, %v48_v11  ;;  %v201_v16 = vpack.c.bf16 %v51_v15, %v50_v14  ;;  %v52_v17 = vld [vmem:[#allocation2 + $0x50] sm:$0xff]  ;;  %v53_v18 = vld [vmem:[#allocation2 + $0x58] sm:$0xff]  ;;  %v54_v20 = vld [vmem:[#allocation2 + $0x60] sm:$0xff] }
  0x17   :  { %191 = vmatprep.subr.bf16.mxu0 %v245_v0  ;;  %v204_v19 = vpack.c.bf16 %v53_v18, %v52_v17  ;;  %v55_v21 = vld [vmem:[#allocation2 + $0x68] sm:$0xff]  ;;  %v56_v23 = vld [vmem:[#allocation2 + $0x70] sm:$0xff]  ;;  %v57_v24 = vld [vmem:[#allocation2 + $0x78] sm:$0xff] }
  0x18   :  { %v207_v22 = vpack.c.bf16 %v55_v21, %v54_v20  ;;  %v210_v25 = vpack.c.bf16 %v57_v24, %v56_v23  ;;  %v41_v26 = vld [vmem:[%s289_s0] sm:$0xff] }
  0x19   :  { %v135_v27 = vld [vmem:[%s291_s2] ss:$0 sm:$0xff] }
  0x1a   :  { %193 = vmatpush3.bf16.msra.mxu0 %v192_v7 }
  0x1b   :  { %194 = vmatprep.subr.bf16.mxu0 %v245_v0 }
  0x1e   :  { %196 = vmatpush3.bf16.msra.mxu0 %v195_v10 }
  0x1f   :  { %197 = vmatprep.subr.bf16.mxu0 %v245_v0 }
  0x22   :  { %199 = vmatpush3.bf16.msra.mxu0 %v198_v13 }
  0x23   :  { %200 = vmatprep.subr.bf16.mxu0 %v245_v0 }
  0x26   :  { %202 = vmatpush3.bf16.msra.mxu0 %v201_v16 }
  0x27   :  { %203 = vmatprep.subr.bf16.mxu0 %v245_v0 }
  0x2a   :  { %205 = vmatpush3.bf16.msra.mxu0 %v204_v19 }
  0x2b   :  { %206 = vmatprep.subr.bf16.mxu0 %v245_v0 }
  0x2e   :  { %208 = vmatpush3.bf16.msra.mxu0 %v207_v22 }
  0x2f   :  { %209 = vmatprep.subr.bf16.mxu0 %v245_v0 }
  0x32   :  { %211 = vmatpush3.bf16.msra.mxu0 %v210_v25 }
  0x35   :  { %186 = vmatmul.mubr.f32.vlgmr.msra.gmra.mrb[0].mxu0 %v41_v26 }
 0x108   :  { %v124_v28 = vpop.f32.mrb[0].mxu0 }
 0x109   :  { %v128_v29 = vadd.f32 %v135_v27, %v124_v28  ;;  %v187_v30 = vpop.f32.mrb[1].mxu0 }
 0x10b   :  { %129 = vst [vmem:[%s292_s3] sm:$0xff] %v128_v29 }
 0x10c   :  { %134 = vsyncpa [#allocation3], 1 }

</bundles_post_ra>
